<compile_context>
chip_gen: v7x
topology: tpu7x:2x2x1
jax: 0.10.0
libtpu: 0.0.40
codegen_flags: <defaults>
</compile_context>

<pallas_src>
import functools

import jax
import jax.numpy as jnp
from jax.experimental import pallas as pl
from jax.experimental.pallas import tpu as pltpu


def _normalize_kernel(x_ref, o_ref, *, power: float):
    # One (block_rows, C) tile, fully resident in VMEM.
    # Reduction: accumulate in f32 without keeping the f32 tile live afterwards.
    xf = x_ref[...].astype(jnp.float32)
    if power == 2:
        s = jnp.sum(xf * xf, axis=1, keepdims=True)          # lane reduction (XLU)
        norm = jnp.sqrt(s)
    else:
        s = jnp.sum(jnp.power(xf, power), axis=1, keepdims=True)
        norm = jnp.power(s, 1.0 / power)
    # Per-row exact reciprocal on the (block_rows, 1) column (tiny, hidden under
    # the HBM stream); the full-tile op is then a cheap VPU multiply.
    inv = pl.reciprocal(norm + 1e-7, approx=False)
    # Re-read the input tile for the scaled store (cheap vld; avoids holding the
    # earlier f32 copy live across the reduction).
    o_ref[...] = (x_ref[...].astype(jnp.float32) * inv).astype(o_ref.dtype)


def _cdiv(a: int, b: int) -> int:
    return -(-a // b)


def _choose_block_rows(n_rows: int, c: int, target_block_bytes: int) -> int:
    """Row tile: as large as the per-buffer VMEM budget allows (8-sublane
    aligned). Keep >= 2 grid steps (pipelining; v7x megacore) and an even step
    count when N has enough rows — never by shrinking below one sublane tile."""
    row_bytes = c * 4  # worst case: f32 working values even for bf16 input
    by_vmem = max(8, (target_block_bytes // max(row_bytes, 1)) // 8 * 8)
    n_ceil8 = ((n_rows + 7) // 8) * 8
    block = max(8, min(by_vmem, n_ceil8))

    if n_rows >= 16:
        steps = _cdiv(n_rows, block)
        if steps == 1:
            # Split into two blocks so both v7x TensorCores get work and the
            # pipeline can overlap DMA with compute (cheap on single-TC parts).
            block = max(8, ((_cdiv(n_rows, 2)) + 7) // 8 * 8)
        elif steps > 2 and steps % 2 == 1:
            # Make the step count even so the two v7x cores stay balanced.
            block = max(8, (_cdiv(n_rows, steps + 1) + 7) // 8 * 8)
    return block


def normalize(x: jax.Array, power: float = 2) -> jax.Array:
    """Lp-normalize each row of a (N, C) array along C (== PyTorch dim=1)."""
    N, C = x.shape

    # Generation-aware VMEM budget.
    try:
        vmem_cap = int(pltpu.get_tpu_info().vmem_capacity_bytes)
    except Exception:  # pragma: no cover - fallback if query unavailable
        vmem_cap = 64 << 20  # be conservative (v7x-sized)
    if vmem_cap >= (96 << 20):        # v5e / v6e: 128 MiB physical VMEM
        target_block_bytes = 12 << 20
        vmem_cap_limit = 80 << 20
    else:                              # v7x: 64 MiB physical VMEM
        target_block_bytes = 4 << 20
        vmem_cap_limit = 36 << 20

    block_rows = _choose_block_rows(N, C, target_block_bytes)
    grid = (pl.cdiv(N, block_rows),)  # partial tail block is masked by Pallas

    # 2x double-buffered input + 2x output (input dtype) + f32 temps, w/ headroom.
    block_bytes = block_rows * C * 4
    vmem_limit = int(min(vmem_cap_limit, max(16 << 20, 6 * block_bytes + (4 << 20))))

    return pl.pallas_call(
        functools.partial(_normalize_kernel, power=power),
        out_shape=jax.ShapeDtypeStruct((N, C), x.dtype),
        grid_spec=pltpu.PrefetchScalarGridSpec(
            num_scalar_prefetch=0,
            grid=grid,
            # Full C per block (legal even when C % 128 != 0, since it equals
            # the array dim) so the dim-1 reduction stays inside one tile and
            # no wrapper-side padding/slicing HBM passes are needed.
            in_specs=[pl.BlockSpec((block_rows, C), lambda i: (i, 0))],
            out_specs=pl.BlockSpec((block_rows, C), lambda i: (i, 0)),
        ),
        compiler_params=pltpu.CompilerParams(
            dimension_semantics=("parallel",),
            vmem_limit_bytes=vmem_limit,
        ),
    )(x)


def _normalize_ref(x, power=2):
    # Pure-JAX reference mirroring the PyTorch module.
    norm = jnp.power(jnp.sum(jnp.power(x, power), axis=1, keepdims=True), 1.0 / power)
    return x / (norm + 1e-7)


if __name__ == "__main__":
    key = jax.random.PRNGKey(0)
    k1, k2 = jax.random.split(key)

    # Case 1: CUT-like patch features — lane-dense C=256; N=24 with a 16-row
    # block exercises the masked tail block and the 2-step (even) grid.
    N1, C1 = 24, 256
    x1 = jax.random.normal(k1, (N1, C1), dtype=jnp.float32)
    out1 = jax.block_until_ready(normalize(x1, power=2))
    ref1 = _normalize_ref(x1, power=2)
    assert out1.shape == (N1, C1) and out1.dtype == x1.dtype
    assert jnp.allclose(out1, ref1, atol=1e-5, rtol=1e-5)

    # Case 2: small C=64 demo shape — exercises the unpadded (C % 128 != 0)
    # path with masked lane stores, no extra HBM pad/slice passes.
    N2, C2 = 16, 64
    x2 = jax.random.normal(k2, (N2, C2), dtype=jnp.float32)
    out2 = jax.block_until_ready(normalize(x2, power=2))
    ref2 = _normalize_ref(x2, power=2)
    assert out2.shape == (N2, C2) and out2.dtype == x2.dtype
    assert jnp.allclose(out2, ref2, atol=1e-5, rtol=1e-5)

    print("KERNEL_OK")
</pallas_src>

<mosaic_0001>
module attributes {stable_mosaic.version = 11 : i64} {
  func.func @_normalize_kernel(%arg0: i32, %arg1: memref<16x256xf32, #tpu.memory_space<vmem>>, %arg2: memref<16x256xf32, #tpu.memory_space<vmem>>) attributes {dimension_semantics = [#tpu.dimension_semantics<parallel>], iteration_bounds = array<i64: 2>, scalar_prefetch = 0 : i64, scratch_operands = 0 : i64, tpu.core_type = #tpu.core_type<tc>, window_params = [{transform_indices = @transform_0, window_bounds = array<i64: 16, 256>}, {transform_indices = @transform_1, window_bounds = array<i64: 16, 256>}]} {
    %c0 = arith.constant 0 : index
    %c0_0 = arith.constant 0 : index
    %0 = vector.load %arg1[%c0, %c0_0] : memref<16x256xf32, #tpu.memory_space<vmem>>, vector<16x256xf32>
    %1 = arith.mulf %0, %0 : vector<16x256xf32>
    %cst = arith.constant dense<0.000000e+00> : vector<16xf32>
    %2 = vector.multi_reduction <add>, %1, %cst [1] : vector<16x256xf32> to vector<16xf32>
    %3 = vector.shape_cast %2 : vector<16xf32> to vector<16x1xf32>
    %4 = math.sqrt %3 : vector<16x1xf32>
    %cst_1 = arith.constant 1.000000e-07 : f32
    %5 = vector.broadcast %cst_1 : f32 to vector<16x1xf32>
    %6 = arith.addf %4, %5 : vector<16x1xf32>
    %7 = tpu.reciprocal %6 : vector<16x1xf32> -> vector<16x1xf32>
    %c0_2 = arith.constant 0 : index
    %c0_3 = arith.constant 0 : index
    %8 = vector.load %arg1[%c0_2, %c0_3] : memref<16x256xf32, #tpu.memory_space<vmem>>, vector<16x256xf32>
    %9 = vector.broadcast %7 : vector<16x1xf32> to vector<16x256xf32>
    %10 = arith.mulf %8, %9 : vector<16x256xf32>
    %c0_4 = arith.constant 0 : index
    %c0_5 = arith.constant 0 : index
    %11 = vector.load %arg2[%c0_4, %c0_5] : memref<16x256xf32, #tpu.memory_space<vmem>>, vector<16x256xf32>
    tpu.vector_store %arg2[%c0_4, %c0_5], %10 {strides = array<i32>} : memref<16x256xf32, #tpu.memory_space<vmem>>, vector<16x256xf32>,
    return
  }
  func.func @transform_0(%arg0: i32) -> (i32, i32) {
    %c0_i32 = arith.constant 0 : i32
    %c0_i32_0 = arith.constant 0 : i32
    return %arg0, %c0_i32 : i32, i32
  }
  func.func @transform_1(%arg0: i32) -> (i32, i32) {
    %c0_i32 = arith.constant 0 : i32
    %c0_i32_0 = arith.constant 0 : i32
    return %arg0, %c0_i32 : i32, i32
  }
}

</mosaic_0001>

<bundles_post_ra>
// kernel: tpu_custom_call.1
= control target key start
LH: loop header
LB: loop body
LE: loop exit
PB: predicated region body
PF: predicated region fallthrough
CT: control target
= control target key end

     0   :  { %6 = vsyncpa [#allocation3], 0  ;;  %s659_s0 = inlined_call_operand.hbm [shape: f32[24,256], index: 0, kind: input, shape index: {}]   ;;  %s660_s1 = inlined_call_operand.hbm [shape: f32[24,256], index: 1, kind: output, shape index: {}]  }
   0x1   :  { %8 = vsyncpa [#allocation3 + $0x1], 0 }
   0x2   :  { %9 = vsyncpa [#allocation4], 0 }
   0x3   :  { %11 = vsyncpa [#allocation4 + $0x1], 0  ;;  %s485_s6 = smov 0   ;;  %s487_s7 = smov 0  }
   0x4   :  { %s489_s8 = smov 0   ;;  %s491_s9 = smov 0  }
   0x5 LB: > { %s506_s10 = sadd.s32 4294967295, %s467_s9   ;;  %s290_s11 = sadd.s32 4294967294, %s467_s9   ;;  %s467_s9 = sphi %s491_s9, %s670_s9   ;;  %s463_s8 = sphi %s489_s8, %s669_s8   ;;  %s459_s7 = sphi %s487_s7, %s668_s7   ;;  %s455_s6 = sphi %s485_s6, %s667_s6  }
   0x6   : > { %s510_s12 = sadd.s32 1, %s467_s9   ;;  %s24_s13 = sadd.s32 1, %s463_s8 }
   0x7   : > { %s21_s14 = ssub.s32 %s467_s9, %s510_s12  ;;  %p31_p0 = scmp.ne.s32.totalorder %s463_s8, %s459_s7 }
   0x8   : > { %p22_p1 = scmp.eq.s32.totalorder %s21_s14, 0  ;;  %p32_p2 = scmp.eq.s32.totalorder %s467_s9, 0 }
   0x9   : > { %p37_p3 = scmp.ne.s32.totalorder %s459_s7, %s455_s6  ;;  %p38_p4 = scmp.eq.s32.totalorder %s506_s10, 0 }
   0xa   : > { %s522_s15 = scalar_select %p22_p1, %s463_s8, %s24_s13  }
   0xb   : > { %p33_p5 = por %p32_p2, %p31_p0  ;;  %p524_p6 = por %p38_p4, %p37_p3 }
   0xc   : > { %p61_p7 = scmp.eq.s32.totalorder %s506_s10, 1  ;;  %p67_p8 = scmp.eq.s32.totalorder %s290_s11, 1 }
   0xd   : > { %p661_p11 = scmp.ge.s32.totalorder %s467_s9, 2 }
   0xe   : > { %p529_p9 = por %p61_p7, %p31_p0  ;;  %p533_p10 = por %p67_p8, %p37_p3 }
   0xf   : > { %83 = sbr.rel (%p661_p11) target bundleno = 57 (0x39), region = 16 }
  0x10   : > { %s664_s18 = scalar_select %p533_p10, 1, 0 }
  0x16   : > { %86 = sbr.rel (!%p33_p5) target bundleno = 57 (0x39), region = 20  ;;  %s87_s19 = sand.u32 (%p33_p5), 1, %s463_s8  }
  0x17   : > { %s294_s20 = sshll.u32 (%p33_p5), %s467_s9, 1  ;;  %s293_s21 = sshll.u32 (%p33_p5), %s87_s19, 5 }
  0x18   : > { %s93_s22 = ssub.s32 (%p33_p5), 3, %s294_s20  ;;  %s545_s25 = scalar_lea.sflag (%p33_p5), [#allocation3], %s87_s19 }
  0x19   : > { %p94_p12 = scmp.lt.s32.totalorder (%p33_p5), %s93_s22, 2  ;;  %s91_s26 = scalar_lea.vmem (%p33_p5), [#allocation2], %s293_s21 }
  0x1d   : > { %s672_s22 = smov (!%p94_p12, %s93_s22), 2 }
  0x1e   : > { %s542_s23 = sshll.u32 %s672_s22, 8 }
  0x1f   : > { %s99_s24 = ssub.s32 512, %s542_s23 }
  0x20   : > { %100 = vsyncadd %s545_s25, %s99_s24  ;;  %p297_p13 = scmp.ne.s32.totalorder %s542_s23, 0  ;;  %s318_s27 = sshll.u32 %s467_s9, 9 }
  0x21   : > { %s553_s30 = scalar_lea.hbm %s659_s0, %s318_s27  ;;  %s106_s2 = sshll.u32 %s91_s26, 4  ;;  %s555_s2 = int_to_ptr.vmem [resolvable:$true] %s106_s2 }
  0x22   : > { %s373_s3 = scalar_lea.hbm %s553_s30, %s542_s23  ;;  %s377_s11 = scalar_lea.hbm %s659_s0, 768 }
  0x23   : > { %p374_p0 = scmp.ne.s32.totalorder %s553_s30, %s373_s3  ;;  %p378_p3 = scmp.lt.u32.totalorder %s553_s30, %s659_s0 }
  0x24   : > { %p379_p4 = scmp.lt.u32.totalorder %s377_s11, %s373_s3  ;;  %p381_p7 = scmp.lt.u32.totalorder %s373_s3, %s553_s30 }
  0x25   : > { %p375_p1 = pnand %p374_p0, %p297_p13 }
  0x26   : > { %p380_p5 = por %p379_p4, %p378_p3 }
  0x27   : > { %p376_p2 = pneg %p375_p1 }
  0x28   : > { %p382_p8 = por %p381_p7, %p380_p5 }
  0x2a   : > { %p383_p12 = pnand %p382_p8, %p376_p2 }
  0x2c   : > { %386 = shalt.err (!%p383_p12)
}
  0x2d   : > { %s387_s19 = scalar_lea.vmem %s555_s2, %s542_s23  ;;  %s469_s20 = smov [#allocation2]  }
  0x2e   : > { %p388_p0 = scmp.ne.s32.totalorder %s555_s2, %s387_s19  ;;  %s391_s21 = sshll.u32 %s469_s20, 4  ;;  %s392_s21 = int_to_ptr.vmem [resolvable:$false] %s391_s21 }
  0x2f   : > { %s393_s22 = scalar_lea.vmem %s392_s21, 1024  ;;  %p394_p10 = scmp.lt.s32.totalorder %s555_s2, %s392_s21 }
  0x30   : > { %p389_p1 = pnand %p388_p0, %p297_p13  ;;  %p395_p3 = scmp.lt.s32.totalorder %s393_s22, %s387_s19 }
  0x32   : > { %p390_p11 = pneg %p389_p1  ;;  %p396_p4 = por %p395_p3, %p394_p10 }
  0x34   : > { %p397_p5 = pnand %p396_p4, %p390_p11 }
  0x36   : > { %400 = shalt.err (!%p397_p5)
}
  0x37   : > { %s470_s24 = smov 256   ;;  %s471_s26 = smov 16  }
  0x38   : > { %112 = dma.hbm_to_vmem [thread:$0]  (%p297_p13), %s553_s30, %s542_s23, %s555_s2, %s545_s25, %s470_s24, %s470_s24, %s471_s26  }
  0x39 PF: > { %p302_p2 = scmp.ge.s32.totalorder %s467_s9, 1  ;;  %p114_p7 = scmp.lt.s32.totalorder %s467_s9, 3 }
  0x3b   : > { %p115_p8 = pnand %p302_p2, %p114_p7 }
  0x3c   : > { %s585_s27 = sand.u32 (!%p115_p8), 1, %s459_s7  }
  0x3d   : > { %118 = sbr.rel (%p115_p8) target bundleno = 279 (0x117), region = 24  ;;  %s303_s28 = sshll.u32 (!%p115_p8), %s585_s27, 5 }
  0x3e   : > { %s121_s29 = scalar_lea.sflag (!%p115_p8), [#allocation3], %s585_s27  ;;  %s124_s3 = scalar_lea.vmem (!%p115_p8), [#allocation2], %s303_s28 }
  0x44   : > { %446 = dma.done.wait (%p524_p6), %s121_s29, 512  }
  0x45   : > { %448 = vsyncadd (%p524_p6), %s121_s29, 4294966784  ;;  %v155_v0 = vld [vmem:[%s124_s3] sm:$0xff]  ;;  %v156_v1 = vld [vmem:[%s124_s3 + $0x8] sm:$0xff]  ;;  %s142_s16 = scalar_lea.vmem [#allocation5], %s303_s28  ;;  %s196_s23 = scalar_lea.sflag [#allocation4], %s585_s27 }
  0x46   : > { %v157_v2 = vld [vmem:[%s124_s3 + $0x10] sm:$0xff]  ;;  %v159_v3 = vmul.f32 %v155_v0, %v155_v0  ;;  %v160_v4 = vmul.f32 %v156_v1, %v156_v1  ;;  %v158_v5 = vld [vmem:[%s124_s3 + $0x18] sm:$0xff]  ;;  %s306_s25 = sshll.u32 (%p529_p9), %s506_s10, 1 }
  0x47   : > { %v161_v6 = vmul.f32 %v157_v2, %v157_v2  ;;  %v162_v7 = vmul.f32 %v158_v5, %v158_v5  ;;  %s204_s30 = ssub.s32 (%p529_p9), 3, %s306_s25 }
  0x48   : > { %v163_v8 = vadd.f32 %v160_v4, %v159_v3  ;;  %p205_p6 = scmp.lt.s32.totalorder (%p529_p9), %s204_s30, 2 }
  0x49   : > { %v166_v9 = vadd.f32 %v162_v7, %v161_v6 }
  0x4a   : > { %164 = vadd.xlane.f32.xlu0 %v163_v8 }
  0x4e   : > { %167 = vadd.xlane.f32.xlu0 %v166_v9 }
  0xd7   : > { %v165_v10 = vpop.xlane.xlu0 %164 }
  0xd8   : > { %365 = vrsqrt.f32 %v165_v10  ;;  %vm171_vm0 = vcmp.eq.f32.partialorder %v165_v10, inf  ;;  %v174_v14 = vand.u32 2147483648, %v165_v10  ;;  %vm173_vm1 = vcmp.eq.f32.partialorder %v165_v10, 0.0 }
  0xdb   : > { %v168_v11 = vpop.xlane.xlu0 %167 }
  0xdc   : > { %367 = vrsqrt.f32 %v168_v11  ;;  %vm178_vm2 = vcmp.eq.f32.partialorder %v168_v11, inf  ;;  %v181_v20 = vand.u32 2147483648, %v168_v11  ;;  %vm180_vm3 = vcmp.eq.f32.partialorder %v168_v11, 0.0 }
  0xe2   : > { %v366_v12 = vpop.eup %365 }
  0xe3   : > { %v170_v13 = vmul.f32 %v366_v12, %v165_v10 }
  0xe5   : > { %v172_v15 = vsel %vm171_vm0, %v165_v10, %v170_v13 }
  0xe6   : > { %v368_v16 = vpop.eup %367  ;;  %v175_v17 = vsel %vm173_vm1, %v174_v14, %v172_v15 }
  0xe7   : > { %v183_v18 = vadd.f32 1e-07, %v175_v17  ;;  %v177_v19 = vmul.f32 %v368_v16, %v168_v11 }
  0xe9   : > { %369 = vrcp.f32 %v183_v18  ;;  %v179_v21 = vsel %vm178_vm2, %v168_v11, %v177_v19 }
  0xea   : > { %v182_v22 = vsel %vm180_vm3, %v181_v20, %v179_v21 }
  0xeb   : > { %v184_v23 = vadd.f32 1e-07, %v182_v22 }
  0xed   : > { %371 = vrcp.f32 %v184_v23 }
  0xf3   : > { %v370_v24 = vpop.eup %369 }
  0xf4   : > { %v187_v25 = vmul.f32 %v370_v24, %v155_v0  ;;  %v188_v26 = vmul.f32 %v370_v24, %v156_v1  ;;  %202 = sbr.rel (!%p529_p9) target bundleno = 279 (0x117), region = 32 }
  0xf6   : > { %191 = vst [vmem:[%s142_s16] sm:$0xff] %v187_v25  ;;  %192 = vst [vmem:[%s142_s16 + $0x8] sm:$0xff] %v188_v26 }
  0xf7   : > { %v372_v27 = vpop.eup %371 }
  0xf8   : > { %v189_v28 = vmul.f32 %v372_v27, %v157_v2  ;;  %v190_v29 = vmul.f32 %v372_v27, %v158_v5 }
  0xfa   : > { %193 = vst [vmem:[%s142_s16 + $0x10] sm:$0xff] %v189_v28  ;;  %194 = vst [vmem:[%s142_s16 + $0x18] sm:$0xff] %v190_v29 }
  0xfb   : > { %s674_s30 = smov (!%p205_p6, %s204_s30), 2 }
  0xfc   : > { %s601_s2 = sshll.u32 %s674_s30, 8 }
  0xfd   : > { %s210_s4 = ssub.s32 512, %s601_s2 }
  0xfe   : > { %211 = vsyncadd %s196_s23, %s210_s4  ;;  %p309_p10 = scmp.ne.s32.totalorder %s601_s2, 0  ;;  %s321_s5 = sshll.u32 %s506_s10, 9 }
  0xff   : > { %s611_s13 = scalar_lea.hbm %s660_s1, %s321_s5  ;;  %s217_s14 = sshll.u32 %s142_s16, 4  ;;  %s613_s14 = int_to_ptr.vmem [resolvable:$true] %s217_s14 }
 0x100   : > { %s401_s19 = scalar_lea.vmem %s613_s14, %s601_s2  ;;  %s472_s20 = smov [#allocation5]  }
 0x101   : > { %p402_p9 = scmp.ne.s32.totalorder %s613_s14, %s401_s19  ;;  %s405_s21 = sshll.u32 %s472_s20, 4  ;;  %s406_s21 = int_to_ptr.vmem [resolvable:$false] %s405_s21 }
 0x102   : > { %s407_s10 = scalar_lea.vmem %s406_s21, 1024  ;;  %p408_p12 = scmp.lt.s32.totalorder %s613_s14, %s406_s21 }
 0x103   : > { %p403_p11 = pnand %p402_p9, %p309_p10  ;;  %p409_p0 = scmp.lt.s32.totalorder %s407_s10, %s401_s19 }
 0x105   : > { %p404_p13 = pneg %p403_p11  ;;  %p410_p1 = por %p409_p0, %p408_p12 }
 0x107   : > { %p411_p3 = pnand %p410_p1, %p404_p13 }
 0x109   : > { %414 = shalt.err (!%p411_p3)
}
 0x10a   : > { %s415_s22 = scalar_lea.hbm %s611_s13, %s601_s2  ;;  %s419_s28 = scalar_lea.hbm %s660_s1, 768 }
 0x10b   : > { %p416_p4 = scmp.ne.s32.totalorder %s611_s13, %s415_s22  ;;  %p420_p7 = scmp.lt.u32.totalorder %s611_s13, %s660_s1 }
 0x10c   : > { %p421_p8 = scmp.lt.u32.totalorder %s419_s28, %s415_s22  ;;  %p423_p9 = scmp.lt.u32.totalorder %s415_s22, %s611_s13 }
 0x10d   : > { %p417_p5 = pnand %p416_p4, %p309_p10 }
 0x10e   : > { %p422_p6 = por %p421_p8, %p420_p7 }
 0x10f   : > { %p418_p2 = pneg %p417_p5 }
 0x110   : > { %p424_p11 = por %p423_p9, %p422_p6 }
 0x112   : > { %p425_p13 = pnand %p424_p11, %p418_p2 }
 0x114   : > { %428 = shalt.err (!%p425_p13)
}
 0x115   : > { %s473_s16 = smov 256   ;;  %s474_s25 = smov 16  }
 0x116   : > { %223 = dma.vmem_to_hbm [thread:$0]  (%p309_p10), %s613_s14, %s601_s2, %s611_s13, %s196_s23, %s473_s16, %s473_s16, %s474_s25  }
 0x117 PF: > { %s232_s30 = sand.u32 1, %s455_s6   ;;  %p665_p12 = scmp.ne.s32.totalorder %s664_s18, 0 }
 0x118   : > { %p666_p0 = scmp.ge.s32.totalorder %s467_s9, 2  ;;  %s233_s4 = scalar_lea.sflag [#allocation4], %s232_s30 }
 0x11a   : > { %p325_p1 = pnand %p666_p0, %p665_p12 }
 0x11c   : > { %450 = dma.done.wait (!%p325_p1), %s233_s4, 512  }
 0x11d   : > { %452 = vsyncadd (!%p325_p1), %s233_s4, 4294966784  ;;  %p14_p3 = scmp.ge.s32.totalorder %s510_s12, 4   ;;  %s667_s6 = smov %s459_s7 }
 0x11e   : > { %s668_s7 = smov %s463_s8  ;;  %s669_s8 = smov %s522_s15 }
 0x11f   : > { %s670_s9 = smov %s510_s12  ;;  %16 = sbr.rel (!%p14_p3) target bundleno = 5 (0x5), region = 69 }
 0x126   :  { %238 = vsyncpa [#allocation3], 1 }
 0x127   :  { %240 = vsyncpa [#allocation3 + $0x1], 1 }
 0x128   :  { %241 = vsyncpa [#allocation4], 1 }
 0x129   :  { %243 = vsyncpa [#allocation4 + $0x1], 1 }

</bundles_post_ra>
